<compile_context>
chip_gen: v7x
topology: tpu7x:2x2x1
jax: 0.10.0
libtpu: 0.0.40
codegen_flags: <defaults>
</compile_context>

<pallas_src>
import functools

import jax
import jax.numpy as jnp
from jax.experimental import pallas as pl
from jax.experimental.pallas import tpu as pltpu

# "FLAGS" chosen for this synthetic instantiation.
FEAT_DIM = 512        # CLIP embedding dim
PROJ_HIDDEN = 256     # FLAGS.proj_hidden
PROJ_HEAD = 128       # FLAGS.proj_head
NUM_PROTO_SETS = 2    # FLAGS.num_proto_sets
NUM_PROTOTYPES = 128  # FLAGS.num_prototypes
EPS = 1e-12           # F.normalize default eps


def _round_up(x, m):
    return (x + m - 1) // m * m


def _spill_kernel(x_ref, w1_ref, b1_ref, w2_ref, b2_ref, protoT_ref, out_ref,
                  *, num_proto_sets, num_prototypes):
    # x: [TB, 512] (f32 or bf16), w1/w2/protoT: bf16, biases: f32, out: [1, TB] f32.
    x = x_ref[...].astype(jnp.bfloat16)

    # Linear(512, H) -> ReLU  (bf16 MXU inputs, f32 accumulation; bias add in f32)
    h = jnp.dot(x, w1_ref[...], preferred_element_type=jnp.float32) + b1_ref[...]
    h = jnp.maximum(h, 0.0)                                               # [TB, H] f32

    # Linear(H, P)
    f = jnp.dot(h.astype(jnp.bfloat16), w2_ref[...],
                preferred_element_type=jnp.float32) + b2_ref[...]          # [TB, P] f32

    # F.normalize: f / max(||f||, eps).  rsqrt(max(ss, eps^2)) == 1/max(sqrt(ss), eps)
    # (sqrt is monotone); rsqrt runs on the otherwise-idle EUP slot.
    ssq = jnp.sum(f * f, axis=-1, keepdims=True)
    f = f * jax.lax.rsqrt(jnp.maximum(ssq, EPS * EPS))                     # [TB, P] f32

    # Prototypes are pre-normalized and pre-transposed to [P, S*N] in the wrapper, so
    # this is a canonical [M,K]x[K,N] MXU matmul — no in-kernel transpose/relayout.
    sims = jnp.dot(f.astype(jnp.bfloat16), protoT_ref[...],
                   preferred_element_type=jnp.float32)                     # [TB, S*N]

    # max over prototypes within each set (static 128-lane slices), mean over sets.
    acc = jnp.max(sims[:, :num_prototypes], axis=1)                        # [TB]
    for s in range(1, num_proto_sets):  # static, tiny trip count
        lo = s * num_prototypes
        acc = acc + jnp.max(sims[:, lo:lo + num_prototypes], axis=1)

    # Lane-dense store: one (1, TB) row per tile (unmasked vst) rather than a (TB, 1)
    # masked column.
    out_ref[...] = (acc * (1.0 / num_proto_sets)).reshape(out_ref.shape)


@jax.jit
def spill_detector_forward(feats, w1, b1, w2, b2, prototypes):
    """feats: [B, 512] CLIP image embeddings (f32 or bf16). Returns sims [B, 1] f32."""
    B, D = feats.shape
    H = w1.shape[1]
    S, N, P = prototypes.shape

    if B == 0:  # guard (padding math below assumes B >= 1)
        return jnp.zeros((0, 1), jnp.float32)

    # Prototypes are parameters (constant across calls): normalize (f32), flatten,
    # transpose to the canonical [K, N] MXU layout, cast to bf16 — all in the wrapper so
    # the per-call kernel never repeats it.  (Keep protos f32 if exact cosine similarity
    # matters downstream; they're only ~64 KiB.)
    p = prototypes.astype(jnp.float32)
    p = p * jax.lax.rsqrt(jnp.maximum(jnp.sum(p * p, axis=-1, keepdims=True), EPS * EPS))
    p_t = p.reshape(S * N, P).T.astype(jnp.bfloat16)        # [P, S*N]

    w1b = w1.astype(jnp.bfloat16)
    w2b = w2.astype(jnp.bfloat16)
    b1f = b1.astype(jnp.float32).reshape(1, H)
    b2f = b2.astype(jnp.float32).reshape(1, P)

    # Batch tiling:
    #   * B <= 256: a single tile (latency path; launch + weight DMA dominate anyway).
    #   * B  > 256: 128-lane-aligned tiles of up to 512 rows (amortizes the ~0.35us
    #     per-grid-step overhead) and at least 2 tiles so the "parallel" axis shards
    #     across both TensorCores on v7x.
    if B <= 256:
        tile_b = _round_up(B, 8)
    else:
        tile_b = min(512, _round_up(-(-B // 2), 128))
    b_pad = _round_up(B, tile_b)
    num_tiles = b_pad // tile_b

    # feats is the only per-tile streamed operand: keep the producer's dtype (pass bf16
    # embeddings to halve HBM traffic); a standalone f32->bf16 wrapper cast would just
    # add an un-fused HBM pass.
    x = feats
    if b_pad != B:
        x = jnp.pad(x, ((0, b_pad - B), (0, 0)))

    flops = 2 * b_pad * (D * H + H * P + P * S * N)
    bytes_accessed = (x.size * x.dtype.itemsize + w1b.size * 2 + w2b.size * 2
                      + p_t.size * 2 + b1f.size * 4 + b2f.size * 4 + b_pad * 4)

    # Per-tile VMEM: <= ~1 MiB feats (x2 buffers) + ~0.4 MiB resident weights/protos —
    # comfortably inside scoped VMEM on v5e/v6e (128 MiB) and v7x (64 MiB).
    # (If profiling on v5e shows exposed feats DMA, pipeline_mode=pl.Buffered(3) on the
    # feats BlockSpec is the next lever; the larger tile largely removes the need.)
    out = pl.pallas_call(
        functools.partial(_spill_kernel, num_proto_sets=S, num_prototypes=N),
        out_shape=jax.ShapeDtypeStruct((1, b_pad), jnp.float32),
        grid_spec=pltpu.PrefetchScalarGridSpec(
            num_scalar_prefetch=0,
            grid=(num_tiles,),
            in_specs=[
                pl.BlockSpec((tile_b, D), lambda i: (i, 0)),   # feats (streamed)
                pl.BlockSpec((D, H), lambda i: (0, 0)),        # w1 (resident)
                pl.BlockSpec((1, H), lambda i: (0, 0)),        # b1
                pl.BlockSpec((H, P), lambda i: (0, 0)),        # w2
                pl.BlockSpec((1, P), lambda i: (0, 0)),        # b2
                pl.BlockSpec((P, S * N), lambda i: (0, 0)),    # protos^T (resident)
            ],
            out_specs=pl.BlockSpec((1, tile_b), lambda i: (0, i)),  # lane-dense rows
        ),
        compiler_params=pltpu.CompilerParams(
            dimension_semantics=("parallel",)),
        cost_estimate=pl.CostEstimate(
            flops=flops, transcendentals=b_pad, bytes_accessed=bytes_accessed),
    )(x, w1b, b1f, w2b, b2f, p_t)

    return out[0, :B].reshape(B, 1)


def _reference(feats, w1, b1, w2, b2, prototypes):
    """Pure-JAX f32 reference matching the PyTorch forward."""
    h = jnp.maximum(feats @ w1 + b1, 0.0)
    f = h @ w2 + b2
    f = f / jnp.maximum(jnp.linalg.norm(f, axis=-1, keepdims=True), EPS)
    p = prototypes / jnp.maximum(
        jnp.linalg.norm(prototypes, axis=-1, keepdims=True), EPS)
    sims = jnp.einsum("bd,snd->sbn", f, p)                      # [S, B, N]
    return jnp.max(sims, axis=2, keepdims=True).mean(axis=0)    # [B, 1]


if __name__ == "__main__":
    key = jax.random.PRNGKey(0)
    k_x, k_w1, k_b1, k_w2, k_b2, k_p = jax.random.split(key, 6)

    B = 8  # number of image crops per frame
    feats = jax.random.normal(k_x, (B, FEAT_DIM), dtype=jnp.float32)

    # Deterministic synthetic parameters (shapes follow the module's __init__).
    w1 = jax.random.normal(k_w1, (FEAT_DIM, PROJ_HIDDEN), jnp.float32) * 0.02
    b1 = jax.random.normal(k_b1, (1, PROJ_HIDDEN), jnp.float32) * 0.02
    w2 = jax.random.normal(k_w2, (PROJ_HIDDEN, PROJ_HEAD), jnp.float32) * 0.02
    b2 = jax.random.normal(k_b2, (1, PROJ_HEAD), jnp.float32) * 0.02
    prototypes = jax.random.normal(
        k_p, (NUM_PROTO_SETS, NUM_PROTOTYPES, PROJ_HEAD), jnp.float32)

    out = spill_detector_forward(feats, w1, b1, w2, b2, prototypes)
    jax.block_until_ready(out)

    ref = _reference(feats, w1, b1, w2, b2, prototypes)
    assert out.shape == (B, 1)
    # bf16 weights/prototypes on the MXU path -> relaxed tolerance vs. the f32 reference.
    assert jnp.allclose(out, ref, atol=2e-2, rtol=2e-2), (
        f"max abs err {jnp.max(jnp.abs(out - ref))}")

    print("KERNEL_OK")
</pallas_src>

<mosaic_0001>
module attributes {stable_mosaic.version = 11 : i64} {
  func.func @_spill_kernel(%arg0: i32, %arg1: memref<8x512xf32, #tpu.memory_space<vmem>>, %arg2: memref<512x256xbf16, #tpu.memory_space<vmem>>, %arg3: memref<1x256xf32, #tpu.memory_space<vmem>>, %arg4: memref<256x128xbf16, #tpu.memory_space<vmem>>, %arg5: memref<1x128xf32, #tpu.memory_space<vmem>>, %arg6: memref<128x256xbf16, #tpu.memory_space<vmem>>, %arg7: memref<1x8xf32, #tpu.memory_space<vmem>>) attributes {dimension_semantics = [#tpu.dimension_semantics<parallel>], iteration_bounds = array<i64: 1>, scalar_prefetch = 0 : i64, scratch_operands = 0 : i64, tpu.core_type = #tpu.core_type<tc>, window_params = [{transform_indices = @transform_0, window_bounds = array<i64: 8, 512>}, {pipeline_mode = #tpu.pipeline_mode<synchronous>, transform_indices = @transform_1, window_bounds = array<i64: 512, 256>}, {pipeline_mode = #tpu.pipeline_mode<synchronous>, transform_indices = @transform_2, window_bounds = array<i64: 1, 256>}, {pipeline_mode = #tpu.pipeline_mode<synchronous>, transform_indices = @transform_3, window_bounds = array<i64: 256, 128>}, {pipeline_mode = #tpu.pipeline_mode<synchronous>, transform_indices = @transform_4, window_bounds = array<i64: 1, 128>}, {pipeline_mode = #tpu.pipeline_mode<synchronous>, transform_indices = @transform_5, window_bounds = array<i64: 128, 256>}, {transform_indices = @transform_6, window_bounds = array<i64: 1, 8>}]} {
    %c0 = arith.constant 0 : index
    %c0_0 = arith.constant 0 : index
    %0 = vector.load %arg1[%c0, %c0_0] : memref<8x512xf32, #tpu.memory_space<vmem>>, vector<8x512xf32>
    %1 = arith.truncf %0 : vector<8x512xf32> to vector<8x512xbf16>
    %c0_1 = arith.constant 0 : index
    %c0_2 = arith.constant 0 : index
    %2 = vector.load %arg2[%c0_1, %c0_2] : memref<512x256xbf16, #tpu.memory_space<vmem>>, vector<512x256xbf16>
    %cst = arith.constant dense<0.000000e+00> : vector<8x256xf32>
    %3 = tpu.matmul %1, %2, %cst {dimension_numbers = #tpu.dot_dimension_numbers<[1], [0], [0], [1], [0, 0, 1, 1], [], []>} : vector<8x512xbf16>, vector<512x256xbf16>, vector<8x256xf32> -> vector<8x256xf32>
    %c0_3 = arith.constant 0 : index
    %c0_4 = arith.constant 0 : index
    %4 = vector.load %arg3[%c0_3, %c0_4] : memref<1x256xf32, #tpu.memory_space<vmem>>, vector<1x256xf32>
    %5 = vector.broadcast %4 : vector<1x256xf32> to vector<8x256xf32>
    %6 = arith.addf %3, %5 : vector<8x256xf32>
    %cst_5 = arith.constant 0.000000e+00 : f32
    %7 = vector.broadcast %cst_5 : f32 to vector<8x256xf32>
    %8 = arith.maximumf %6, %7 : vector<8x256xf32>
    %9 = arith.truncf %8 : vector<8x256xf32> to vector<8x256xbf16>
    %c0_6 = arith.constant 0 : index
    %c0_7 = arith.constant 0 : index
    %10 = vector.load %arg4[%c0_6, %c0_7] : memref<256x128xbf16, #tpu.memory_space<vmem>>, vector<256x128xbf16>
    %cst_8 = arith.constant dense<0.000000e+00> : vector<8x128xf32>
    %11 = tpu.matmul %9, %10, %cst_8 {dimension_numbers = #tpu.dot_dimension_numbers<[1], [0], [0], [1], [0, 0, 1, 1], [], []>} : vector<8x256xbf16>, vector<256x128xbf16>, vector<8x128xf32> -> vector<8x128xf32>
    %c0_9 = arith.constant 0 : index
    %c0_10 = arith.constant 0 : index
    %12 = vector.load %arg5[%c0_9, %c0_10] : memref<1x128xf32, #tpu.memory_space<vmem>>, vector<1x128xf32>
    %13 = vector.broadcast %12 : vector<1x128xf32> to vector<8x128xf32>
    %14 = arith.addf %11, %13 : vector<8x128xf32>
    %15 = arith.mulf %14, %14 : vector<8x128xf32>
    %cst_11 = arith.constant dense<0.000000e+00> : vector<8xf32>
    %16 = vector.multi_reduction <add>, %15, %cst_11 [1] : vector<8x128xf32> to vector<8xf32>
    %17 = vector.shape_cast %16 : vector<8xf32> to vector<8x1xf32>
    %cst_12 = arith.constant 1.000000e-24 : f32
    %18 = vector.broadcast %cst_12 : f32 to vector<8x1xf32>
    %19 = arith.maximumf %17, %18 : vector<8x1xf32>
    %20 = math.rsqrt %19 : vector<8x1xf32>
    %21 = vector.broadcast %20 : vector<8x1xf32> to vector<8x128xf32>
    %22 = arith.mulf %14, %21 : vector<8x128xf32>
    %23 = arith.truncf %22 : vector<8x128xf32> to vector<8x128xbf16>
    %c0_13 = arith.constant 0 : index
    %c0_14 = arith.constant 0 : index
    %24 = vector.load %arg6[%c0_13, %c0_14] : memref<128x256xbf16, #tpu.memory_space<vmem>>, vector<128x256xbf16>
    %cst_15 = arith.constant dense<0.000000e+00> : vector<8x256xf32>
    %25 = tpu.matmul %23, %24, %cst_15 {dimension_numbers = #tpu.dot_dimension_numbers<[1], [0], [0], [1], [0, 0, 1, 1], [], []>} : vector<8x128xbf16>, vector<128x256xbf16>, vector<8x256xf32> -> vector<8x256xf32>
    %26 = vector.extract_strided_slice %25 {offsets = [0, 0], sizes = [8, 128], strides = [1, 1]} : vector<8x256xf32> to vector<8x128xf32>
    %cst_16 = arith.constant dense<0xFF800000> : vector<8xf32>
    %27 = vector.multi_reduction <maximumf>, %26, %cst_16 [1] : vector<8x128xf32> to vector<8xf32>
    %28 = vector.extract_strided_slice %25 {offsets = [0, 128], sizes = [8, 128], strides = [1, 1]} : vector<8x256xf32> to vector<8x128xf32>
    %cst_17 = arith.constant dense<0xFF800000> : vector<8xf32>
    %29 = vector.multi_reduction <maximumf>, %28, %cst_17 [1] : vector<8x128xf32> to vector<8xf32>
    %30 = arith.addf %27, %29 : vector<8xf32>
    %cst_18 = arith.constant 5.000000e-01 : f32
    %31 = vector.broadcast %cst_18 : f32 to vector<8xf32>
    %32 = arith.mulf %30, %31 : vector<8xf32>
    %33 = vector.shape_cast %32 : vector<8xf32> to vector<1x8xf32>
    %c0_19 = arith.constant 0 : index
    %c0_20 = arith.constant 0 : index
    %34 = vector.load %arg7[%c0_19, %c0_20] : memref<1x8xf32, #tpu.memory_space<vmem>>, vector<1x8xf32>
    tpu.vector_store %arg7[%c0_19, %c0_20], %33 {strides = array<i32>} : memref<1x8xf32, #tpu.memory_space<vmem>>, vector<1x8xf32>,
    return
  }
  func.func @transform_0(%arg0: i32) -> (i32, i32) {
    %c0_i32 = arith.constant 0 : i32
    %c0_i32_0 = arith.constant 0 : i32
    return %arg0, %c0_i32 : i32, i32
  }
  func.func @transform_1(%arg0: i32) -> (i32, i32) {
    %c0_i32 = arith.constant 0 : i32
    %c0_i32_0 = arith.constant 0 : i32
    %c0_i32_1 = arith.constant 0 : i32
    return %c0_i32, %c0_i32_0 : i32, i32
  }
  func.func @transform_2(%arg0: i32) -> (i32, i32) {
    %c0_i32 = arith.constant 0 : i32
    %c0_i32_0 = arith.constant 0 : i32
    %c0_i32_1 = arith.constant 0 : i32
    return %c0_i32, %c0_i32_0 : i32, i32
  }
  func.func @transform_3(%arg0: i32) -> (i32, i32) {
    %c0_i32 = arith.constant 0 : i32
    %c0_i32_0 = arith.constant 0 : i32
    %c0_i32_1 = arith.constant 0 : i32
    return %c0_i32, %c0_i32_0 : i32, i32
  }
  func.func @transform_4(%arg0: i32) -> (i32, i32) {
    %c0_i32 = arith.constant 0 : i32
    %c0_i32_0 = arith.constant 0 : i32
    %c0_i32_1 = arith.constant 0 : i32
    return %c0_i32, %c0_i32_0 : i32, i32
  }
  func.func @transform_5(%arg0: i32) -> (i32, i32) {
    %c0_i32 = arith.constant 0 : i32
    %c0_i32_0 = arith.constant 0 : i32
    %c0_i32_1 = arith.constant 0 : i32
    return %c0_i32, %c0_i32_0 : i32, i32
  }
  func.func @transform_6(%arg0: i32) -> (i32, i32) {
    %c0_i32 = arith.constant 0 : i32
    %c0_i32_0 = arith.constant 0 : i32
    return %c0_i32, %arg0 : i32, i32
  }
}

</mosaic_0001>

<bundles_post_ra>
// kernel: spill_detector_forward.1
= control target key start
LH: loop header
LB: loop body
LE: loop exit
PB: predicated region body
PF: predicated region fallthrough
CT: control target
= control target key end

     0   :  { %s1515_s0 = inlined_call_operand.vmem [shape: f32[8,512], index: 0, kind: input, shape index: {}]   ;;  %s1516_s1 = inlined_call_operand.vmem [shape: bf16[512,256], index: 1, kind: input, shape index: {}]   ;;  %s1517_s2 = inlined_call_operand.vmem [shape: f32[1,256], index: 2, kind: input, shape index: {}]   ;;  %s1518_s3 = inlined_call_operand.vmem [shape: bf16[256,128], index: 3, kind: input, shape index: {}]   ;;  %s1519_s4 = inlined_call_operand.vmem [shape: f32[1,128], index: 4, kind: input, shape index: {}]   ;;  %s1520_s5 = inlined_call_operand.vmem [shape: bf16[128,256], index: 5, kind: input, shape index: {}]   ;;  %s1521_s6 = inlined_call_operand.hbm [shape: f32[1,8], index: 6, kind: output, shape index: {}]  }
   0x1   :  { %v991_v0 = vld [vmem:[%s1516_s1 + $0x4] ss:$8 sps:$4 sm:$0xff]   ;;  %v993_v1 = vld [vmem:[%s1516_s1] ss:$8 sps:$4 sm:$0xff]   ;;  %v994_v2 = vld [vmem:[%s1516_s1 + $0x14] ss:$8 sps:$4 sm:$0xff]  }
   0x2   :  { %429 = vmatprep.subr.bf16.mxu0 %v991_v0  ;;  %v996_v3 = vld [vmem:[%s1516_s1 + $0x10] ss:$8 sps:$4 sm:$0xff]   ;;  %v997_v4 = vld [vmem:[%s1516_s1 + $0x24] ss:$8 sps:$4 sm:$0xff]   ;;  %v999_v5 = vld [vmem:[%s1516_s1 + $0x20] ss:$8 sps:$4 sm:$0xff]  }
   0x3   :  { %430 = vmatpush1.bf16.msra.mxu0 %v993_v1  ;;  %v1000_v6 = vld [vmem:[%s1516_s1 + $0x34] ss:$8 sps:$4 sm:$0xff]   ;;  %v1002_v7 = vld [vmem:[%s1516_s1 + $0x30] ss:$8 sps:$4 sm:$0xff]   ;;  %v1003_v8 = vld [vmem:[%s1516_s1 + $0x44] ss:$8 sps:$4 sm:$0xff]  }
   0x4   :  { %431 = vmatprep.subr.bf16.mxu0 %v994_v2  ;;  %v1005_v9 = vld [vmem:[%s1516_s1 + $0x40] ss:$8 sps:$4 sm:$0xff]   ;;  %v1006_v10 = vld [vmem:[%s1516_s1 + $0x54] ss:$8 sps:$4 sm:$0xff]   ;;  %v1008_v11 = vld [vmem:[%s1516_s1 + $0x50] ss:$8 sps:$4 sm:$0xff]  }
   0x5   :  { %v1009_v12 = vld [vmem:[%s1516_s1 + $0x64] ss:$8 sps:$4 sm:$0xff]   ;;  %v1011_v15 = vld [vmem:[%s1516_s1 + $0x60] ss:$8 sps:$4 sm:$0xff]   ;;  %v1012_v16 = vld [vmem:[%s1516_s1 + $0x74] ss:$8 sps:$4 sm:$0xff]  }
   0x6   :  { %v26_v13 = vld [vmem:[%s1515_s0 + $0x8] sm:$0xff]  ;;  %v1014_v17 = vld [vmem:[%s1516_s1 + $0x70] ss:$8 sps:$4 sm:$0xff]   ;;  %v1018_v20 = vld [vmem:[%s1516_s1 + $0x94] ss:$8 sps:$4 sm:$0xff]  }
   0x7   :  { %432 = vmatpush1.bf16.msra.mxu0 %v996_v3  ;;  %v30_v14 = vpack.c.bf16 %v26_v13, %v26_v13  ;;  %v1015_v18 = vld [vmem:[%s1516_s1 + $0x84] ss:$8 sps:$4 sm:$0xff]   ;;  %v1017_v19 = vld [vmem:[%s1516_s1 + $0x80] ss:$8 sps:$4 sm:$0xff]   ;;  %v1020_v21 = vld [vmem:[%s1516_s1 + $0x90] ss:$8 sps:$4 sm:$0xff]  }
   0x8   :  { %433 = vmatprep.subr.bf16.mxu0 %v997_v4  ;;  %v1021_v22 = vld [vmem:[%s1516_s1 + $0xa4] ss:$8 sps:$4 sm:$0xff]   ;;  %v1023_v23 = vld [vmem:[%s1516_s1 + $0xa0] ss:$8 sps:$4 sm:$0xff]   ;;  %v1024_v24 = vld [vmem:[%s1516_s1 + $0xb4] ss:$8 sps:$4 sm:$0xff]  }
   0x9   :  { %461 = vmatprep.mubr.bf16.mxu0 %v30_v14  ;;  %v1026_v25 = vld [vmem:[%s1516_s1 + $0xb0] ss:$8 sps:$4 sm:$0xff]   ;;  %v1027_v26 = vld [vmem:[%s1516_s1 + $0xc4] ss:$8 sps:$4 sm:$0xff]   ;;  %v1029_v28 = vld [vmem:[%s1516_s1 + $0xc0] ss:$8 sps:$4 sm:$0xff]  }
   0xa   :  { %v1087_v27 = vld [vmem:[%s1518_s3 + $0x40] sm:$0xff]   ;;  %v1030_v30 = vld [vmem:[%s1516_s1 + $0xd4] ss:$8 sps:$4 sm:$0xff]   ;;  %v1089_v31 = vld [vmem:[%s1518_s3 + $0x48] sm:$0xff]  }
   0xb   :  { %434 = vmatpush1.bf16.msra.mxu0 %v999_v5  ;;  %v1088_v29 = vld [vmem:[%s1518_s3] sm:$0xff]   ;;  %961 = vmatprep.subr.bf16.mxu1 %v1087_v27  ;;  %v1090_v32 = vld [vmem:[%s1518_s3 + $0x8] sm:$0xff]   ;;  %v1091_v33 = vld [vmem:[%s1518_s3 + $0x50] sm:$0xff]  }
   0xc   :  { %435 = vmatprep.subr.bf16.mxu0 %v1000_v6  ;;  %962 = vmatpush3.bf16.msra.mxu1 %v1088_v29  ;;  %v1032_v34 = vld [vmem:[%s1516_s1 + $0xd0] ss:$8 sps:$4 sm:$0xff]   ;;  %v1033_v35 = vld [vmem:[%s1516_s1 + $0xe4] ss:$8 sps:$4 sm:$0xff]   ;;  %v1035_v38 = vld [vmem:[%s1516_s1 + $0xe0] ss:$8 sps:$4 sm:$0xff]  }
   0xd   :  { %963 = vmatprep.subr.bf16.mxu1 %v1089_v31  ;;  %v1092_v36 = vld [vmem:[%s1518_s3 + $0x10] sm:$0xff]   ;;  %v1093_v37 = vld [vmem:[%s1518_s3 + $0x58] sm:$0xff]   ;;  %v1095_v41 = vld [vmem:[%s1518_s3 + $0x60] sm:$0xff]  }
   0xe   :  { %v1036_v39 = vld [vmem:[%s1516_s1 + $0xf4] ss:$8 sps:$4 sm:$0xff]   ;;  %v1038_v42 = vld [vmem:[%s1516_s1 + $0xf0] ss:$8 sps:$4 sm:$0xff]   ;;  %v25_v43 = vld [vmem:[%s1515_s0] sm:$0xff] }
   0xf   :  { %436 = vmatpush1.bf16.msra.mxu0 %v1002_v7  ;;  %v1094_v40 = vld [vmem:[%s1518_s3 + $0x18] sm:$0xff]   ;;  %v1096_v44 = vld [vmem:[%s1518_s3 + $0x20] sm:$0xff]   ;;  %v1097_v47 = vld [vmem:[%s1518_s3 + $0x68] sm:$0xff]   ;;  %v29_v49 = vpack.c.bf16 %v25_v43, %v25_v43 }
  0x10   :  { %437 = vmatprep.subr.bf16.mxu0 %v1003_v8  ;;  %964 = vmatpush3.bf16.msra.mxu1 %v1090_v32  ;;  %v1041_v45 = vld [vmem:[%s1516_s1 + $0x104] ss:$8 sps:$4 sm:$0xff]   ;;  %v28_v46 = vld [vmem:[%s1515_s0 + $0x18] sm:$0xff]  ;;  %v1039_v48 = vld [vmem:[%s1516_s1 + $0x100] ss:$8 sps:$4 sm:$0xff]  }
  0x11   :  { %965 = vmatprep.subr.bf16.mxu1 %v1091_v33  ;;  %v1044_v50 = vld [vmem:[%s1516_s1 + $0x114] ss:$8 sps:$4 sm:$0xff]   ;;  %v32_v51 = vpack.c.bf16 %v28_v46, %v28_v46  ;;  %v1098_v52 = vld [vmem:[%s1518_s3 + $0x28] sm:$0xff]  }
  0x13   :  { %438 = vmatpush1.bf16.msra.mxu0 %v1005_v9 }
  0x14   :  { %439 = vmatprep.subr.bf16.mxu0 %v1006_v10  ;;  %966 = vmatpush3.bf16.msra.mxu1 %v1092_v36 }
  0x15   :  { %967 = vmatprep.subr.bf16.mxu1 %v1093_v37 }
  0x17   :  { %440 = vmatpush1.bf16.msra.mxu0 %v1008_v11 }
  0x18   :  { %441 = vmatprep.subr.bf16.mxu0 %v1009_v12  ;;  %968 = vmatpush3.bf16.msra.mxu1 %v1094_v40 }
  0x19   :  { %969 = vmatprep.subr.bf16.mxu1 %v1095_v41 }
  0x1b   :  { %442 = vmatpush1.bf16.msra.mxu0 %v1011_v15 }
  0x1c   :  { %443 = vmatprep.subr.bf16.mxu0 %v1012_v16  ;;  %970 = vmatpush3.bf16.msra.mxu1 %v1096_v44 }
  0x1d   :  { %971 = vmatprep.subr.bf16.mxu1 %v1097_v47 }
  0x1f   :  { %444 = vmatpush1.bf16.msra.mxu0 %v1014_v17 }
  0x20   :  { %445 = vmatprep.subr.bf16.mxu0 %v1015_v18 }
  0x23   :  { %446 = vmatpush1.bf16.msra.mxu0 %v1017_v19 }
  0x24   :  { %447 = vmatprep.subr.bf16.mxu0 %v1018_v20 }
  0x27   :  { %448 = vmatpush1.bf16.msra.mxu0 %v1020_v21 }
  0x28   :  { %449 = vmatprep.subr.bf16.mxu0 %v1021_v22 }
  0x2b   :  { %450 = vmatpush1.bf16.msra.mxu0 %v1023_v23 }
  0x2c   :  { %451 = vmatprep.subr.bf16.mxu0 %v1024_v24 }
  0x2f   :  { %452 = vmatpush1.bf16.msra.mxu0 %v1026_v25 }
  0x30   :  { %453 = vmatprep.subr.bf16.mxu0 %v1027_v26 }
  0x33   :  { %454 = vmatpush1.bf16.msra.mxu0 %v1029_v28 }
  0x34   :  { %455 = vmatprep.subr.bf16.mxu0 %v1030_v30 }
  0x37   :  { %456 = vmatpush1.bf16.msra.mxu0 %v1032_v34 }
  0x38   :  { %457 = vmatprep.subr.bf16.mxu0 %v1033_v35 }
  0x3b   :  { %458 = vmatpush1.bf16.msra.mxu0 %v1035_v38 }
  0x3c   :  { %459 = vmatprep.subr.bf16.mxu0 %v1036_v39 }
  0x3f   :  { %460 = vmatpush1.bf16.msra.mxu0 %v1038_v42 }
  0x40   :  { %470 = vmatprep.subr.bf16.mxu0 %v1041_v45 }
  0x41   :  { %11 = vsyncpa [#allocation3], 0  ;;  %v1042_v53 = vld [vmem:[%s1516_s1 + $0x110] ss:$8 sps:$4 sm:$0xff]   ;;  %v1047_v54 = vld [vmem:[%s1516_s1 + $0x124] ss:$8 sps:$4 sm:$0xff]   ;;  %972 = vmatpush3.bf16.msra.mxu1 %v1098_v52  ;;  %v99_v24 = vlaneseq }
  0x42   :  { %462 = vmatmul.mubr.bf16.vlgmr.msra.gmra.mrb[0].mxu0 %v29_v49  ;;  %v1045_v55 = vld [vmem:[%s1516_s1 + $0x120] ss:$8 sps:$4 sm:$0xff]   ;;  %v1050_v56 = vld [vmem:[%s1516_s1 + $0x134] ss:$8 sps:$4 sm:$0xff]   ;;  %v1048_v57 = vld [vmem:[%s1516_s1 + $0x130] ss:$8 sps:$4 sm:$0xff]  }
  0x43   :  { %471 = vmatpush1.bf16.msra.mxu0 %v1039_v48  ;;  %502 = vmatprep.mubr.bf16.mxu0 %v32_v51  ;;  %v1053_v58 = vld [vmem:[%s1516_s1 + $0x144] ss:$8 sps:$4 sm:$0xff]   ;;  %v1051_v59 = vld [vmem:[%s1516_s1 + $0x140] ss:$8 sps:$4 sm:$0xff]   ;;  %v1056_v60 = vld [vmem:[%s1516_s1 + $0x154] ss:$8 sps:$4 sm:$0xff]  }
  0x44   :  { %472 = vmatprep.subr.bf16.mxu0 %v1044_v50  ;;  %v1054_v61 = vld [vmem:[%s1516_s1 + $0x150] ss:$8 sps:$4 sm:$0xff]   ;;  %v1059_v62 = vld [vmem:[%s1516_s1 + $0x164] ss:$8 sps:$4 sm:$0xff]   ;;  %v1057_v63 = vld [vmem:[%s1516_s1 + $0x160] ss:$8 sps:$4 sm:$0xff]  }
  0x45   :  { %v1062_v0 = vld [vmem:[%s1516_s1 + $0x174] ss:$8 sps:$4 sm:$0xff]   ;;  %v1060_v1 = vld [vmem:[%s1516_s1 + $0x170] ss:$8 sps:$4 sm:$0xff]   ;;  %v1065_v2 = vld [vmem:[%s1516_s1 + $0x184] ss:$8 sps:$4 sm:$0xff]  }
  0x46   :  { %v1063_v3 = vld [vmem:[%s1516_s1 + $0x180] ss:$8 sps:$4 sm:$0xff]   ;;  %v1068_v4 = vld [vmem:[%s1516_s1 + $0x194] ss:$8 sps:$4 sm:$0xff]   ;;  %v1066_v5 = vld [vmem:[%s1516_s1 + $0x190] ss:$8 sps:$4 sm:$0xff]  }
  0x47   :  { %473 = vmatpush1.bf16.msra.mxu0 %v1042_v53  ;;  %v1071_v6 = vld [vmem:[%s1516_s1 + $0x1a4] ss:$8 sps:$4 sm:$0xff]   ;;  %v1069_v7 = vld [vmem:[%s1516_s1 + $0x1a0] ss:$8 sps:$4 sm:$0xff]   ;;  %v1074_v8 = vld [vmem:[%s1516_s1 + $0x1b4] ss:$8 sps:$4 sm:$0xff]  }
  0x48   :  { %474 = vmatprep.subr.bf16.mxu0 %v1047_v54  ;;  %v1072_v9 = vld [vmem:[%s1516_s1 + $0x1b0] ss:$8 sps:$4 sm:$0xff]   ;;  %v1077_v10 = vld [vmem:[%s1516_s1 + $0x1c4] ss:$8 sps:$4 sm:$0xff]   ;;  %v1075_v11 = vld [vmem:[%s1516_s1 + $0x1c0] ss:$8 sps:$4 sm:$0xff]  }
  0x49   :  { %v1080_v12 = vld [vmem:[%s1516_s1 + $0x1d4] ss:$8 sps:$4 sm:$0xff]   ;;  %v1078_v13 = vld [vmem:[%s1516_s1 + $0x1d0] ss:$8 sps:$4 sm:$0xff]   ;;  %v1083_v14 = vld [vmem:[%s1516_s1 + $0x1e4] ss:$8 sps:$4 sm:$0xff]  }
  0x4a   :  { %v1081_v15 = vld [vmem:[%s1516_s1 + $0x1e0] ss:$8 sps:$4 sm:$0xff]   ;;  %v1086_v16 = vld [vmem:[%s1516_s1 + $0x1f4] ss:$8 sps:$4 sm:$0xff]   ;;  %v1084_v17 = vld [vmem:[%s1516_s1 + $0x1f0] ss:$8 sps:$4 sm:$0xff]  }
  0x4b   :  { %475 = vmatpush1.bf16.msra.mxu0 %v1045_v55  ;;  %v27_v18 = vld [vmem:[%s1515_s0 + $0x10] sm:$0xff]  ;;  %v1101_v22 = vld [vmem:[%s1518_s3 + $0x78] sm:$0xff]   ;;  %v1443_v25 = vshrl.u32 %v99_v24, 7  ;;  %v97_v27 = vld [vmem:[%s1517_s2] sm:$0x3]  ;;  %vm848_vm0 = vcmask 57344  }
  0x4c   :  { %476 = vmatprep.subr.bf16.mxu0 %v1050_v56  ;;  %v31_v19 = vpack.c.bf16 %v27_v18, %v27_v18  ;;  %v1099_v20 = vld [vmem:[%s1518_s3 + $0x70] sm:$0xff]   ;;  %v1102_v23 = vld [vmem:[%s1518_s3 + $0x38] sm:$0xff]   ;;  %v1103_v41 = vld [vmem:[%s1520_s5] ss:$8 sps:$4 sm:$0xff]  }
  0x4d   :  { %v1100_v21 = vld [vmem:[%s1518_s3 + $0x30] sm:$0xff]   ;;  %973 = vmatprep.subr.bf16.mxu1 %v1099_v20  ;;  %v101_v26 = vsub.s32 0, %v1443_v25  ;;  %v105_v28 = vsub.s32 1, %v1443_v25  ;;  %v1105_v42 = vld [vmem:[%s1520_s5 + $0x4] ss:$8 sps:$4 sm:$0xff]  }
  0x4e   :  { %974 = vmatpush3.bf16.msra.mxu1 %v1100_v21  ;;  %v1108_v43 = vld [vmem:[%s1520_s5 + $0x14] ss:$8 sps:$4 sm:$0xff]   ;;  %v1106_v44 = vld [vmem:[%s1520_s5 + $0x10] ss:$8 sps:$4 sm:$0xff]   ;;  %v1111_v45 = vld [vmem:[%s1520_s5 + $0x24] ss:$8 sps:$4 sm:$0xff]  }
  0x4f   :  { %477 = vmatpush1.bf16.msra.mxu0 %v1048_v57  ;;  %975 = vmatprep.subr.bf16.mxu1 %v1101_v22  ;;  %v102_v29 = vrot.slane %v97_v27, %v101_v26  ;;  %v106_v30 = vrot.slane %v97_v27, %v105_v28  ;;  %v1109_v46 = vld [vmem:[%s1520_s5 + $0x20] ss:$8 sps:$4 sm:$0xff]   ;;  %v1114_v47 = vld [vmem:[%s1520_s5 + $0x34] ss:$8 sps:$4 sm:$0xff]   ;;  %v1112_v48 = vld [vmem:[%s1520_s5 + $0x30] ss:$8 sps:$4 sm:$0xff]  }
  0x50   :  { %478 = vmatprep.subr.bf16.mxu0 %v1053_v58  ;;  %v928_v51 = vld [vmem:[%s1519_s4] ss:$0 sm:$0xff]  ;;  %v1117_v57 = vld [vmem:[%s1520_s5 + $0x44] ss:$8 sps:$4 sm:$0xff]  }
  0x51   :  { %v1115_v58 = vld [vmem:[%s1520_s5 + $0x40] ss:$8 sps:$4 sm:$0xff]  }
  0x52   :  { %976 = vmatpush3.bf16.msra.mxu1 %v1102_v23 }
  0x53   :  { %479 = vmatpush1.bf16.msra.mxu0 %v1051_v59  ;;  %793 = vmatprep.subr.bf16.mxu1 %v1105_v42  ;;  %v1118_v59 = vld [vmem:[%s1520_s5 + $0x50] ss:$8 sps:$4 sm:$0xff]  }
  0x54   :  { %480 = vmatprep.subr.bf16.mxu0 %v1056_v60  ;;  %v1120_v60 = vld [vmem:[%s1520_s5 + $0x54] ss:$8 sps:$4 sm:$0xff]  }
  0x57   :  { %481 = vmatpush1.bf16.msra.mxu0 %v1054_v61  ;;  %v1123_v61 = vld [vmem:[%s1520_s5 + $0x64] ss:$8 sps:$4 sm:$0xff]  }
  0x58   :  { %482 = vmatprep.subr.bf16.mxu0 %v1059_v62  ;;  %v1153_v62 = vmov 0  }
  0x5b   :  { %483 = vmatpush1.bf16.msra.mxu0 %v1057_v63  ;;  %v1121_v63 = vld [vmem:[%s1520_s5 + $0x60] ss:$8 sps:$4 sm:$0xff]  }
  0x5c   :  { %484 = vmatprep.subr.bf16.mxu0 %v1062_v0  ;;  %v1126_v0 = vld [vmem:[%s1520_s5 + $0x74] ss:$8 sps:$4 sm:$0xff]  }
  0x5f   :  { %485 = vmatpush1.bf16.msra.mxu0 %v1060_v1  ;;  %v1124_v1 = vld [vmem:[%s1520_s5 + $0x70] ss:$8 sps:$4 sm:$0xff]   ;;  %s1154_s5 = smov [#allocation2]  }
  0x60   :  { %486 = vmatprep.subr.bf16.mxu0 %v1065_v2  ;;  %s856_s24 = sshll.u32 %s1154_s5, 4  ;;  %s857_s24 = int_to_ptr.vmem [resolvable:$true] %s856_s24 }
  0x61   :  { %s1129_s25 = scalar_lea.vmem %s857_s24, 16  ;;  %s1133_s26 = scalar_lea.vmem %s857_s24, 32 }
  0x62   :  { %p1130_p0 = scmp.ne.s32.totalorder %s857_s24, %s1129_s25  ;;  %p1134_p1 = scmp.lt.s32.totalorder %s857_s24, %s857_s24 }
  0x63   :  { %487 = vmatpush1.bf16.msra.mxu0 %v1063_v3  ;;  %p1135_p2 = scmp.lt.s32.totalorder %s1133_s26, %s1129_s25 }
  0x64   :  { %488 = vmatprep.subr.bf16.mxu0 %v1068_v4 }
  0x65   :  { %p1136_p3 = por %p1135_p2, %p1134_p1 }
  0x67   :  { %489 = vmatpush1.bf16.msra.mxu0 %v1066_v5  ;;  %p1137_p4 = pnand %p1136_p3, %p1130_p0 }
  0x68   :  { %490 = vmatprep.subr.bf16.mxu0 %v1071_v6 }
  0x6b   :  { %491 = vmatpush1.bf16.msra.mxu0 %v1069_v7 }
  0x6c   :  { %492 = vmatprep.subr.bf16.mxu0 %v1074_v8 }
  0x6f   :  { %493 = vmatpush1.bf16.msra.mxu0 %v1072_v9 }
  0x70   :  { %494 = vmatprep.subr.bf16.mxu0 %v1077_v10 }
  0x73   :  { %495 = vmatpush1.bf16.msra.mxu0 %v1075_v11  ;;  %v842_v11 = vand.u32 127, %v99_v24 }
  0x74   :  { %496 = vmatprep.subr.bf16.mxu0 %v1080_v12 }
  0x77   :  { %497 = vmatpush1.bf16.msra.mxu0 %v1078_v13 }
  0x78   :  { %498 = vmatprep.subr.bf16.mxu0 %v1083_v14  ;;  %v845_v14 = vsub.s32 %v842_v11, %v1443_v25 }
  0x7b   :  { %499 = vmatpush1.bf16.msra.mxu0 %v1081_v15 }
  0x7c   :  { %500 = vmatprep.subr.bf16.mxu0 %v1086_v16 }
  0x7f   :  { %501 = vmatpush1.bf16.msra.mxu0 %v1084_v17 }
  0x82   :  { %503 = vmatmul.mubr.bf16.vlgmr.msra.gmra.mrb[0].mxu0 %v31_v19 }
 0x155   :  { %v504_v31 = vpop.f32.mrb[0].mxu0 }
 0x156   :  { %v983_v32 = vadd.f32 %v504_v31, %v102_v29  ;;  %v506_v33 = vpop.f32.mrb[1].mxu0 }
 0x157   :  { %v984_v34 = vadd.f32 %v506_v33, %v106_v30  ;;  %v508_v35 = vpop.f32.mrb[2].mxu0 }
 0x158   :  { %v511_v36 = vmax.f32 %v983_v32, 0.0  ;;  %v509_v37 = vpop.f32.mrb[3].mxu0 }
 0x159   :  { %v512_v38 = vmax.f32 %v984_v34, 0.0 }
 0x15a   :  { %v513_v40 = vpack.c.bf16 %v511_v36, %v511_v36 }
 0x15b   :  { %v514_v39 = vpack.c.bf16 %v512_v38, %v512_v38 }
 0x15d   :  { %682 = vmatprep.mubr.bf16.mxu1 %v514_v39 }
 0x15e   :  { %683 = vmatmul.mubr.bf16.vlgmr.msra.gmra.mrb[0].mxu1 %v513_v40 }
 0x15f   :  { %794 = vmatpush1.bf16.msra.mxu1 %v1103_v41  ;;  %825 = vmatprep.mubr.bf16.mxu1 %v1153_v62 }
 0x160   :  { %795 = vmatprep.subr.bf16.mxu1 %v1108_v43 }
 0x163   :  { %796 = vmatpush1.bf16.msra.mxu1 %v1106_v44 }
 0x164   :  { %797 = vmatprep.subr.bf16.mxu1 %v1111_v45 }
 0x167   :  { %798 = vmatpush1.bf16.msra.mxu1 %v1109_v46 }
 0x168   :  { %799 = vmatprep.subr.bf16.mxu1 %v1114_v47 }
 0x16b   :  { %800 = vmatpush1.bf16.msra.mxu1 %v1112_v48 }
 0x16c   :  { %801 = vmatprep.subr.bf16.mxu1 %v1117_v57 }
 0x16f   :  { %802 = vmatpush1.bf16.msra.mxu1 %v1115_v58 }
 0x170   :  { %803 = vmatprep.subr.bf16.mxu1 %v1120_v60 }
 0x173   :  { %804 = vmatpush1.bf16.msra.mxu1 %v1118_v59 }
 0x174   :  { %805 = vmatprep.subr.bf16.mxu1 %v1123_v61 }
 0x177   :  { %806 = vmatpush1.bf16.msra.mxu1 %v1121_v63 }
 0x178   :  { %807 = vmatprep.subr.bf16.mxu1 %v1126_v0 }
 0x17b   :  { %808 = vmatpush1.bf16.msra.mxu1 %v1124_v1 }
 0x231   :  { %v977_v49 = vpop.f32.mrb[0].mxu1 }
 0x232   :  { %v978_v50 = vpop.f32.mrb[1].mxu1 }
 0x233   :  { %v979_v52 = vadd.f32 %v978_v50, %v977_v49  ;;  %v980_v53 = vpop.f32.mrb[2].mxu1 }
 0x234   :  { %v981_v54 = vpop.f32.mrb[3].mxu1 }
 0x235   :  { %v685_v55 = vadd.f32 %v979_v52, %v928_v51 }
 0x237   :  { %v690_v56 = vmul.f32 %v685_v55, %v685_v55 }
 0x239   :  { %691 = vadd.xlane.f32.xlu0 %v690_v56 }
 0x2c6   :  { %v692_v2 = vpop.xlane.xlu0 %691 }
 0x2c7   :  { %v693_v3 = vmax.f32 %v692_v2, 1e-24 }
 0x2c9   :  { %1127 = vrsqrt.f32 %v693_v3 }
 0x2d3   :  { %v1128_v4 = vpop.eup %1127 }
 0x2d4   :  { %v695_v5 = vmul.f32 %v1128_v4, %v685_v55 }
 0x2d6   :  { %v696_v6 = vpack.c.bf16 %v695_v5, %v695_v5 }
 0x2d8   :  { %826 = vmatmul.mubr.bf16.vlgmr.msra.gmra.mrb[4].mxu1 %v696_v6 }
 0x3ab   :  { %v827_v7 = vpop.f32.mrb[4].mxu1 }
 0x3ac   :  { %834 = vmax.xlane.f32.xlu0 %v827_v7  ;;  %v829_v8 = vpop.f32.mrb[5].mxu1 }
 0x3ad   :  { %836 = vmax.xlane.f32.xlu1 %v829_v8  ;;  %v831_v9 = vpop.f32.mrb[6].mxu1 }
 0x3ae   :  { %v832_v10 = vpop.f32.mrb[7].mxu1 }
 0x439   :  { %v835_v12 = vpop.xlane.xlu0 %834 }
 0x43a   :  { %v837_v13 = vpop.xlane.xlu1 %836 }
 0x43b   :  { %v838_v15 = vadd.f32 %v837_v13, %v835_v12 }
 0x43d   :  { %v839_v16 = vmul.f32 0.5, %v838_v15 }
 0x43f   :  { %v846_v17 = vrot.slane %v839_v16, %v845_v14 }
 0x441   :  { %849 = vst.msk [vmem:[#allocation2] sm:$0x1] %vm848_vm0, %v846_v17 }
 0x442   :  { %1140 = shalt.err (!%p1137_p4)
}
 0x443   :  { %s1141_s29 = scalar_lea.hbm %s1521_s6, 16 }
 0x444   :  { %p1142_p5 = scmp.ne.s32.totalorder %s1521_s6, %s1141_s29  ;;  %p1145_p6 = scmp.lt.u32.totalorder %s1141_s29, %s1521_s6 }
 0x446   :  { %p1147_p7 = pnand %p1145_p6, %p1142_p5 }
 0x448   :  { %1150 = shalt.err (!%p1147_p7)
}
 0x449   :  { %859 = dma.vmem_to_hbm [thread:$0]  %s857_s24, 16, %s1521_s6, [#allocation3]  }
 0x44a   :  { %1151 = dma.done.wait [#allocation3], 16  }
 0x44b   :  { %1152 = vsyncadd [#allocation3], 4294967280 }
 0x44c   :  { %863 = vsyncpa [#allocation3], 1 }

</bundles_post_ra>
